<compile_context>
chip_gen: v7x
topology: tpu7x:2x2x1
jax: 0.10.0
libtpu: 0.0.40
codegen_flags: <defaults>
</compile_context>

<pallas_src>
import functools
import re
from typing import NamedTuple

import jax
import jax.numpy as jnp
from jax.experimental import pallas as pl
from jax.experimental.pallas import tpu as pltpu

BN_EPS = 1e-5
_MIB = 1024 * 1024


def _round_up(x, m):
    return ((x + m - 1) // m) * m


# ----------------------------------------------------------------------------
# Generation / capability detection (best-effort, conservative fallbacks).
# ----------------------------------------------------------------------------
@functools.lru_cache(maxsize=1)
def _tpu_generation() -> int:
    try:
        kind = jax.devices()[0].device_kind.lower()
    except Exception:
        return 7  # unknown -> be conservative (smallest VMEM assumptions)
    m = re.search(r"(\d+)", kind)
    return int(m.group(1)) if m else 7


def _vmem_capacity_bytes(gen: int) -> int:
    try:
        cap = int(getattr(pltpu.get_tpu_info(), "vmem_capacity_bytes"))
        if cap > 0:
            return cap
    except Exception:
        pass
    return (64 if gen >= 7 else 128) * _MIB


def _buffered(n: int):
    try:
        return pl.Buffered(n)
    except TypeError:
        return pl.Buffered(buffer_count=n)


@functools.lru_cache(maxsize=1)
def _pipeline_mode_supported() -> bool:
    """Probe once whether BlockSpec(pipeline_mode=pl.Buffered(1)) lowers & runs."""
    try:
        def _copy(x_ref, o_ref):
            o_ref[...] = x_ref[...]

        x = jnp.full((8, 128), 3.0, jnp.float32)
        out = pl.pallas_call(
            _copy,
            out_shape=jax.ShapeDtypeStruct((8, 128), jnp.float32),
            grid=(1,),
            in_specs=[pl.BlockSpec((8, 128), lambda i: (0, 0),
                                   pipeline_mode=_buffered(1))],
            out_specs=pl.BlockSpec((8, 128), lambda i: (0, 0)),
        )(x)
        out = jax.block_until_ready(out)
        return bool(jnp.all(out == 3.0))
    except Exception:
        return False


def _spec(block_shape, index_map, *, buffers=None, enable=True):
    if buffers is not None and enable:
        return pl.BlockSpec(block_shape, index_map, pipeline_mode=_buffered(buffers))
    return pl.BlockSpec(block_shape, index_map)


def _footprint_bytes(b_pad, c_in, th, p_pad, h_pad, x_bufs, w_bufs):
    """Exact-ish per-core VMEM footprint for a candidate hidden tile TH."""
    return int(
        x_bufs * b_pad * c_in * 2          # x (bf16, resident)
        + w_bufs * c_in * th * 2           # w1 column tiles (bf16, streamed)
        + w_bufs * th * p_pad * 2          # w2 row tiles (bf16, streamed)
        + 2 * 2 * h_pad * 4                # gamma + beta (f32, resident, <=2 bufs)
        + 2 * p_pad * 4                    # b2 (f32)
        + 2 * b_pad * p_pad * 4            # resident f32 output block
        + 6 * b_pad * th * 4               # (B, TH) f32 intermediates headroom
        + 2 * _MIB                         # misc slack
    )


# ----------------------------------------------------------------------------
# Config + one-time parameter formatting (no per-call weight pad/cast traffic).
# ----------------------------------------------------------------------------
class HeadConfig(NamedTuple):
    in_channels: int
    hidden: int
    proj: int
    hidden_pad: int
    proj_pad: int
    tile_h: int
    num_cores: int
    tiles_per_core: int
    w_buffers: int
    use_pipeline_mode: bool
    vmem_limit: int


def prepare_params(w1, b1, gamma, beta, w2, b2, *, batch_hint=256):
    """One-time formatting of the MLPHead parameters for the Pallas kernel.

    w1: (C_in, H), w2: (H, P) pre-transposed (in, out).  b1 is accepted for
    nn.Linear interface parity but cancels exactly under training-mode BN.
    `batch_hint` should be >= the runtime batch size (used for tile sizing).
    """
    del b1  # exact cancellation: BN subtracts mean(h + b1) = mean(h) + b1
    w1 = jnp.asarray(w1, jnp.float32)
    w2 = jnp.asarray(w2, jnp.float32)
    C_in, H = w1.shape
    H2, P = w2.shape
    assert H2 == H, "w2 must be (H, P)"

    gen = _tpu_generation()
    use_pm = _pipeline_mode_supported()
    cap = _vmem_capacity_bytes(gen)
    vmem_budget = 100 * _MIB if cap >= 96 * _MIB else max(cap - 8 * _MIB, 16 * _MIB)

    granule = 256 if gen >= 6 else 128            # match 256x256 MXU on v6e/v7x
    p_gran = granule if P > 128 else 128
    P_pad = _round_up(P, p_gran)
    B_hint = _round_up(max(int(batch_hint), 8), 8)
    x_bufs = 1 if use_pm else 2
    w_bufs = 3 if gen == 5 else 2                 # extra weight buffer on v5e

    # Largest TH (multiple of granule) whose exact footprint fits the budget.
    th_max = max(granule, _round_up(H, granule))
    TH = granule
    th = granule
    while th <= th_max:
        if _footprint_bytes(B_hint, C_in, th, P_pad, _round_up(H, th),
                            x_bufs, w_bufs) <= vmem_budget:
            TH = th
        th += granule

    H_pad = _round_up(H, TH)
    n_tiles = H_pad // TH
    NC = 2 if (gen >= 7 and n_tiles >= 2) else 1  # v7x: split H tiles across 2 TCs
    if n_tiles % NC:
        n_tiles = _round_up(n_tiles, NC)
        H_pad = n_tiles * TH
    TPC = n_tiles // NC

    def pad2(a, shape):
        return jnp.pad(a, [(0, t - s) for s, t in zip(a.shape, shape)])

    w1_p = pad2(w1, (C_in, H_pad)).astype(jnp.bfloat16)
    w2_p = pad2(w2, (H_pad, P_pad)).astype(jnp.bfloat16)
    gamma_t = pad2(jnp.asarray(gamma, jnp.float32).reshape(1, H),
                   (1, H_pad)).reshape(n_tiles, TH)
    beta_t = pad2(jnp.asarray(beta, jnp.float32).reshape(1, H),
                  (1, H_pad)).reshape(n_tiles, TH)
    b2_p = pad2(jnp.asarray(b2, jnp.float32).reshape(1, P), (1, P_pad))

    cfg = HeadConfig(
        in_channels=C_in, hidden=H, proj=P,
        hidden_pad=H_pad, proj_pad=P_pad, tile_h=TH,
        num_cores=NC, tiles_per_core=TPC,
        w_buffers=w_bufs, use_pipeline_mode=use_pm,
        vmem_limit=int(vmem_budget),
    )
    return cfg, (w1_p, gamma_t, beta_t, w2_p, b2_p)


# ----------------------------------------------------------------------------
# Kernel
# ----------------------------------------------------------------------------
def _mlp_head_kernel(x_ref, w1_ref, gamma_ref, beta_ref, w2_ref, b2_ref, o_ref,
                     *, inv_batch, pad_rows, tiles_per_core):
    c = pl.program_id(0)                       # core (v7x megacore split over H)
    k = pl.program_id(1)                       # hidden tile within this core
    tile = c * tiles_per_core + k              # global hidden-tile index

    @pl.when(k == 0)
    def _init():
        o_ref[...] = jnp.zeros_like(o_ref)     # resident f32 partial accumulator

    # ---- Linear 1 on this H-tile (b1 cancels under batch-mean subtraction) ----
    h = jnp.dot(x_ref[...], w1_ref[...], preferred_element_type=jnp.float32)

    # ---- BatchNorm1d, training-mode batch statistics (two-pass / centered) ----
    gamma = gamma_ref[pl.ds(tile, 1), :]       # resident (n_tiles, TH) -> (1, TH)
    beta = beta_ref[pl.ds(tile, 1), :]
    mean = jnp.sum(h, axis=0, keepdims=True) * inv_batch
    centered = h - mean
    # Padded batch rows have h == 0 exactly, so each contributes mean^2 to the
    # centered sum of squares; subtract that contribution for exact statistics.
    var = (jnp.sum(centered * centered, axis=0, keepdims=True)
           - pad_rows * (mean * mean)) * inv_batch
    var = jnp.maximum(var, 0.0)
    inv_std = jax.lax.rsqrt(var + BN_EPS)
    h_act = jnp.maximum(centered * (inv_std * gamma) + beta, 0.0).astype(jnp.bfloat16)

    # ---- Linear 2 partial product, accumulated into the resident output block ----
    o_ref[...] += jnp.dot(h_act, w2_ref[...], preferred_element_type=jnp.float32)

    @pl.when((k == tiles_per_core - 1) & (c == 0))
    def _add_bias():
        o_ref[...] += b2_ref[...]


# ----------------------------------------------------------------------------
# Apply (hot path): consumes pre-formatted params, no weight pad/cast per call.
# ----------------------------------------------------------------------------
@functools.partial(jax.jit, static_argnames=("cfg",))
def mlp_head_apply(x, packed, *, cfg: HeadConfig):
    w1_p, gamma_t, beta_t, w2_p, b2_p = packed
    B, C_in = x.shape
    assert C_in == cfg.in_channels

    B_pad = _round_up(max(B, 8), 8)            # sublane alignment
    x_b = x.astype(jnp.bfloat16)
    if B_pad != B:
        x_b = jnp.pad(x_b, ((0, B_pad - B), (0, 0)))   # zero rows: stats corrected

    TH, NC, TPC = cfg.tile_h, cfg.num_cores, cfg.tiles_per_core
    P_pad = cfg.proj_pad
    n_tiles = NC * TPC
    use_pm = cfg.use_pipeline_mode
    wb = cfg.w_buffers if cfg.w_buffers != 2 else None   # 2 == Pallas default

    kernel = functools.partial(
        _mlp_head_kernel,
        inv_batch=1.0 / B,
        pad_rows=float(B_pad - B),
        tiles_per_core=TPC,
    )

    partials = pl.pallas_call(
        kernel,
        out_shape=jax.ShapeDtypeStruct((NC, B_pad, P_pad), jnp.float32),
        grid_spec=pltpu.PrefetchScalarGridSpec(
            num_scalar_prefetch=0,
            grid=(NC, TPC),
            in_specs=[
                # x: resident, single-buffered when supported
                _spec((B_pad, C_in), lambda c, k: (0, 0), buffers=1, enable=use_pm),
                # w1 column tile (streamed; 3-deep on v5e)
                _spec((C_in, TH), lambda c, k: (0, c * TPC + k),
                      buffers=wb, enable=use_pm),
                # gamma / beta: fully resident, sliced per-tile inside the kernel
                _spec((n_tiles, TH), lambda c, k: (0, 0), buffers=1, enable=use_pm),
                _spec((n_tiles, TH), lambda c, k: (0, 0), buffers=1, enable=use_pm),
                # w2 row tile (streamed)
                _spec((TH, P_pad), lambda c, k: (c * TPC + k, 0),
                      buffers=wb, enable=use_pm),
                # b2: resident
                _spec((1, P_pad), lambda c, k: (0, 0), buffers=1, enable=use_pm),
            ],
            out_specs=pl.BlockSpec((None, B_pad, P_pad), lambda c, k: (c, 0, 0)),
        ),
        compiler_params=pltpu.CompilerParams(
            dimension_semantics=("parallel", "arbitrary"),
            vmem_limit_bytes=cfg.vmem_limit,
        ),
    )(x_b, w1_p, gamma_t, beta_t, w2_p, b2_p)

    # Cross-core combine of the per-TC partials (NC == 1 everywhere except v7x).
    out = partials[0] if NC == 1 else jnp.sum(partials, axis=0)
    return out[:B, :cfg.proj].astype(x.dtype)


def mlp_head(x, w1, b1, gamma, beta, w2, b2):
    """Convenience one-shot API.  For repeated calls, call prepare_params() once
    and mlp_head_apply() per step to avoid re-padding/casting the weights."""
    cfg, packed = prepare_params(w1, b1, gamma, beta, w2, b2, batch_hint=x.shape[0])
    return mlp_head_apply(x, packed, cfg=cfg)


# ----------------------------------------------------------------------------
# Init + references
# ----------------------------------------------------------------------------
def init_params(key, in_channels, mlp_hidden_size, projection_size):
    k1, k2, k3, k4 = jax.random.split(key, 4)
    s1 = 1.0 / jnp.sqrt(in_channels)
    s2 = 1.0 / jnp.sqrt(mlp_hidden_size)
    w1 = jax.random.uniform(k1, (in_channels, mlp_hidden_size), jnp.float32, -s1, s1)
    b1 = jax.random.uniform(k2, (1, mlp_hidden_size), jnp.float32, -s1, s1)
    gamma = jnp.ones((1, mlp_hidden_size), jnp.float32)
    beta = jnp.zeros((1, mlp_hidden_size), jnp.float32)
    w2 = jax.random.uniform(k3, (mlp_hidden_size, projection_size), jnp.float32, -s2, s2)
    b2 = jax.random.uniform(k4, (1, projection_size), jnp.float32, -s2, s2)
    return w1, b1, gamma, beta, w2, b2


def reference_f32(x, w1, b1, gamma, beta, w2, b2):
    """Exact PyTorch training-mode forward semantics in f32 (with b1)."""
    h = x @ w1 + b1
    mean = h.mean(0, keepdims=True)
    var = ((h - mean) ** 2).mean(0, keepdims=True)
    h = (h - mean) / jnp.sqrt(var + BN_EPS) * gamma.reshape(1, -1) + beta.reshape(1, -1)
    h = jnp.maximum(h, 0.0)
    return h @ w2 + b2.reshape(1, -1)


def reference_bf16(x, w1, b1, gamma, beta, w2, b2):
    """Reference mirroring the kernel's bf16-operand / f32-accumulate math."""
    del b1
    h = jnp.dot(x.astype(jnp.bfloat16), w1.astype(jnp.bfloat16),
                preferred_element_type=jnp.float32)
    mean = h.mean(0, keepdims=True)
    c = h - mean
    var = (c * c).mean(0, keepdims=True)
    h = c * jax.lax.rsqrt(var + BN_EPS) * gamma.reshape(1, -1) + beta.reshape(1, -1)
    h = jnp.maximum(h, 0.0).astype(jnp.bfloat16)
    return jnp.dot(h, w2.astype(jnp.bfloat16),
                   preferred_element_type=jnp.float32) + b2.reshape(1, -1)


if __name__ == "__main__":
    B, C_IN, HIDDEN, PROJ = 8, 32, 64, 16

    key = jax.random.PRNGKey(0)
    kx, kp = jax.random.split(key)
    x = jax.random.normal(kx, (B, C_IN), jnp.float32)
    params = init_params(kp, C_IN, HIDDEN, PROJ)

    # One-time formatting (padding + bf16 cast) outside the hot path.
    cfg, packed = prepare_params(*params, batch_hint=B)

    out = mlp_head_apply(x, packed, cfg=cfg)
    out = jax.block_until_ready(out)
    assert out.shape == (B, PROJ)

    # Tight check vs a JAX reference mirroring the kernel's bf16 math.
    ref_b = reference_bf16(x, *params)
    assert jnp.allclose(out, ref_b, atol=2e-3, rtol=2e-3), "mismatch vs bf16 reference"

    # Loose check vs exact f32 PyTorch-semantics forward (bf16 MXU error budget).
    ref_f = reference_f32(x, *params)
    assert jnp.allclose(out, ref_f, atol=1.5e-1, rtol=1.5e-1), "mismatch vs f32 reference"

    print("KERNEL_OK")
</pallas_src>

<mosaic_0001>
module attributes {stable_mosaic.version = 11 : i64} {
  func.func @_copy(%arg0: i32, %arg1: memref<8x128xf32, #tpu.memory_space<vmem>>, %arg2: memref<8x128xf32, #tpu.memory_space<vmem>>) attributes {dimension_semantics = [#tpu.dimension_semantics<arbitrary>], iteration_bounds = array<i64: 1>, scalar_prefetch = 0 : i64, scratch_operands = 0 : i64, tpu.core_type = #tpu.core_type<tc>, window_params = [{pipeline_mode = #tpu.pipeline_mode<synchronous>, transform_indices = @transform_0, window_bounds = array<i64: 8, 128>}, {pipeline_mode = #tpu.pipeline_mode<synchronous>, transform_indices = @transform_1, window_bounds = array<i64: 8, 128>}]} {
    %c0 = arith.constant 0 : index
    %c0_0 = arith.constant 0 : index
    %0 = vector.load %arg1[%c0, %c0_0] : memref<8x128xf32, #tpu.memory_space<vmem>>, vector<8x128xf32>
    %c0_1 = arith.constant 0 : index
    %c0_2 = arith.constant 0 : index
    %1 = vector.load %arg2[%c0_1, %c0_2] : memref<8x128xf32, #tpu.memory_space<vmem>>, vector<8x128xf32>
    tpu.vector_store %arg2[%c0_1, %c0_2], %0 {strides = array<i32>} : memref<8x128xf32, #tpu.memory_space<vmem>>, vector<8x128xf32>,
    return
  }
  func.func @transform_0(%arg0: i32) -> (i32, i32) {
    %c0_i32 = arith.constant 0 : i32
    %c0_i32_0 = arith.constant 0 : i32
    %c0_i32_1 = arith.constant 0 : i32
    return %c0_i32, %c0_i32_0 : i32, i32
  }
  func.func @transform_1(%arg0: i32) -> (i32, i32) {
    %c0_i32 = arith.constant 0 : i32
    %c0_i32_0 = arith.constant 0 : i32
    %c0_i32_1 = arith.constant 0 : i32
    return %c0_i32, %c0_i32_0 : i32, i32
  }
}

module attributes {stable_mosaic.version = 11 : i64} {
  func.func @_mlp_head_kernel(%arg0: i32, %arg1: i32, %arg2: memref<8x32xbf16, #tpu.memory_space<vmem>>, %arg3: memref<32x256xbf16, #tpu.memory_space<vmem>>, %arg4: memref<1x256xf32, #tpu.memory_space<vmem>>, %arg5: memref<1x256xf32, #tpu.memory_space<vmem>>, %arg6: memref<256x128xbf16, #tpu.memory_space<vmem>>, %arg7: memref<1x128xf32, #tpu.memory_space<vmem>>, %arg8: memref<1x8x128xf32, #tpu.memory_space<vmem>>) attributes {dimension_semantics = [#tpu.dimension_semantics<parallel>, #tpu.dimension_semantics<arbitrary>], iteration_bounds = array<i64: 1, 1>, scalar_prefetch = 0 : i64, scratch_operands = 0 : i64, tpu.core_type = #tpu.core_type<tc>, window_params = [{pipeline_mode = #tpu.pipeline_mode<synchronous>, transform_indices = @transform_0, window_bounds = array<i64: 8, 32>}, {transform_indices = @transform_1, window_bounds = array<i64: 32, 256>}, {pipeline_mode = #tpu.pipeline_mode<synchronous>, transform_indices = @transform_2, window_bounds = array<i64: 1, 256>}, {pipeline_mode = #tpu.pipeline_mode<synchronous>, transform_indices = @transform_3, window_bounds = array<i64: 1, 256>}, {transform_indices = @transform_4, window_bounds = array<i64: 256, 128>}, {pipeline_mode = #tpu.pipeline_mode<synchronous>, transform_indices = @transform_5, window_bounds = array<i64: 1, 128>}, {transform_indices = @transform_6, window_bounds = array<i64: 1, 8, 128>}]} {
    %c1_i32 = arith.constant 1 : i32
    %0 = arith.muli %arg0, %c1_i32 : i32
    %1 = arith.addi %0, %arg1 : i32
    %c0_i32 = arith.constant 0 : i32
    %2 = arith.cmpi eq, %arg1, %c0_i32 : i32
    %3 = arith.extui %2 : i1 to i32
    %c0_i32_0 = arith.constant 0 : i32
    %4 = arith.cmpi ne, %3, %c0_i32_0 : i32
    scf.if %4 {
      %cst_26 = arith.constant 0.000000e+00 : f32
      %53 = vector.broadcast %cst_26 : f32 to vector<8x128xf32>
      %c0_27 = arith.constant 0 : index
      %c0_28 = arith.constant 0 : index
      %c0_29 = arith.constant 0 : index
      %54 = vector.load %arg8[%c0_27, %c0_28, %c0_29] : memref<1x8x128xf32, #tpu.memory_space<vmem>>, vector<1x8x128xf32>
      %55 = vector.shape_cast %54 : vector<1x8x128xf32> to vector<8x128xf32>
      %56 = vector.shape_cast %53 : vector<8x128xf32> to vector<1x8x128xf32>
      tpu.vector_store %arg8[%c0_27, %c0_28, %c0_29], %56 {strides = array<i32>} : memref<1x8x128xf32, #tpu.memory_space<vmem>>, vector<1x8x128xf32>,
    } else {
    }
    %c0 = arith.constant 0 : index
    %c0_1 = arith.constant 0 : index
    %5 = vector.load %arg2[%c0, %c0_1] : memref<8x32xbf16, #tpu.memory_space<vmem>>, vector<8x32xbf16>
    %c0_2 = arith.constant 0 : index
    %c0_3 = arith.constant 0 : index
    %6 = vector.load %arg3[%c0_2, %c0_3] : memref<32x256xbf16, #tpu.memory_space<vmem>>, vector<32x256xbf16>
    %cst = arith.constant dense<0.000000e+00> : vector<8x256xf32>
    %7 = tpu.matmul %5, %6, %cst {dimension_numbers = #tpu.dot_dimension_numbers<[1], [0], [0], [1], [0, 0, 1, 1], [], []>} : vector<8x32xbf16>, vector<32x256xbf16>, vector<8x256xf32> -> vector<8x256xf32>
    %8 = arith.index_cast %1 : i32 to index
    %c0_4 = arith.constant 0 : index
    %9 = vector.load %arg4[%8, %c0_4] : memref<1x256xf32, #tpu.memory_space<vmem>>, vector<1x256xf32>
    %10 = arith.index_cast %1 : i32 to index
    %c0_5 = arith.constant 0 : index
    %11 = vector.load %arg5[%10, %c0_5] : memref<1x256xf32, #tpu.memory_space<vmem>>, vector<1x256xf32>
    %cst_6 = arith.constant dense<0.000000e+00> : vector<256xf32>
    %12 = vector.multi_reduction <add>, %7, %cst_6 [0] : vector<8x256xf32> to vector<256xf32>
    %13 = vector.shape_cast %12 : vector<256xf32> to vector<1x256xf32>
    %cst_7 = arith.constant 1.250000e-01 : f32
    %14 = vector.broadcast %cst_7 : f32 to vector<1x256xf32>
    %15 = arith.mulf %13, %14 : vector<1x256xf32>
    %16 = vector.broadcast %15 : vector<1x256xf32> to vector<8x256xf32>
    %17 = arith.subf %7, %16 : vector<8x256xf32>
    %18 = arith.mulf %17, %17 : vector<8x256xf32>
    %cst_8 = arith.constant dense<0.000000e+00> : vector<256xf32>
    %19 = vector.multi_reduction <add>, %18, %cst_8 [0] : vector<8x256xf32> to vector<256xf32>
    %20 = vector.shape_cast %19 : vector<256xf32> to vector<1x256xf32>
    %21 = arith.mulf %15, %15 : vector<1x256xf32>
    %cst_9 = arith.constant 0.000000e+00 : f32
    %22 = vector.broadcast %cst_9 : f32 to vector<1x256xf32>
    %23 = arith.mulf %22, %21 : vector<1x256xf32>
    %24 = arith.subf %20, %23 : vector<1x256xf32>
    %cst_10 = arith.constant 1.250000e-01 : f32
    %25 = vector.broadcast %cst_10 : f32 to vector<1x256xf32>
    %26 = arith.mulf %24, %25 : vector<1x256xf32>
    %cst_11 = arith.constant 0.000000e+00 : f32
    %27 = vector.broadcast %cst_11 : f32 to vector<1x256xf32>
    %28 = arith.maximumf %26, %27 : vector<1x256xf32>
    %cst_12 = arith.constant 9.99999974E-6 : f32
    %29 = vector.broadcast %cst_12 : f32 to vector<1x256xf32>
    %30 = arith.addf %28, %29 : vector<1x256xf32>
    %31 = math.rsqrt %30 : vector<1x256xf32>
    %32 = arith.mulf %31, %9 : vector<1x256xf32>
    %33 = vector.broadcast %32 : vector<1x256xf32> to vector<8x256xf32>
    %34 = arith.mulf %17, %33 : vector<8x256xf32>
    %35 = vector.broadcast %11 : vector<1x256xf32> to vector<8x256xf32>
    %36 = arith.addf %34, %35 : vector<8x256xf32>
    %cst_13 = arith.constant 0.000000e+00 : f32
    %37 = vector.broadcast %cst_13 : f32 to vector<8x256xf32>
    %38 = arith.maximumf %36, %37 : vector<8x256xf32>
    %39 = arith.truncf %38 : vector<8x256xf32> to vector<8x256xbf16>
    %c0_14 = arith.constant 0 : index
    %c0_15 = arith.constant 0 : index
    %c0_16 = arith.constant 0 : index
    %40 = vector.load %arg8[%c0_14, %c0_15, %c0_16] : memref<1x8x128xf32, #tpu.memory_space<vmem>>, vector<1x8x128xf32>
    %41 = vector.shape_cast %40 : vector<1x8x128xf32> to vector<8x128xf32>
    %c0_17 = arith.constant 0 : index
    %c0_18 = arith.constant 0 : index
    %42 = vector.load %arg6[%c0_17, %c0_18] : memref<256x128xbf16, #tpu.memory_space<vmem>>, vector<256x128xbf16>
    %cst_19 = arith.constant dense<0.000000e+00> : vector<8x128xf32>
    %43 = tpu.matmul %39, %42, %cst_19 {dimension_numbers = #tpu.dot_dimension_numbers<[1], [0], [0], [1], [0, 0, 1, 1], [], []>} : vector<8x256xbf16>, vector<256x128xbf16>, vector<8x128xf32> -> vector<8x128xf32>
    %44 = arith.addf %41, %43 : vector<8x128xf32>
    %c0_20 = arith.constant 0 : index
    %c0_21 = arith.constant 0 : index
    %c0_22 = arith.constant 0 : index
    %45 = vector.load %arg8[%c0_20, %c0_21, %c0_22] : memref<1x8x128xf32, #tpu.memory_space<vmem>>, vector<1x8x128xf32>
    %46 = vector.shape_cast %45 : vector<1x8x128xf32> to vector<8x128xf32>
    %47 = vector.shape_cast %44 : vector<8x128xf32> to vector<1x8x128xf32>
    tpu.vector_store %arg8[%c0_20, %c0_21, %c0_22], %47 {strides = array<i32>} : memref<1x8x128xf32, #tpu.memory_space<vmem>>, vector<1x8x128xf32>,
    %c0_i32_23 = arith.constant 0 : i32
    %48 = arith.cmpi eq, %arg1, %c0_i32_23 : i32
    %c0_i32_24 = arith.constant 0 : i32
    %49 = arith.cmpi eq, %arg0, %c0_i32_24 : i32
    %50 = arith.andi %48, %49 : i1
    %51 = arith.extui %50 : i1 to i32
    %c0_i32_25 = arith.constant 0 : i32
    %52 = arith.cmpi ne, %51, %c0_i32_25 : i32
    scf.if %52 {
      %c0_26 = arith.constant 0 : index
      %c0_27 = arith.constant 0 : index
      %c0_28 = arith.constant 0 : index
      %53 = vector.load %arg8[%c0_26, %c0_27, %c0_28] : memref<1x8x128xf32, #tpu.memory_space<vmem>>, vector<1x8x128xf32>
      %54 = vector.shape_cast %53 : vector<1x8x128xf32> to vector<8x128xf32>
      %c0_29 = arith.constant 0 : index
      %c0_30 = arith.constant 0 : index
      %55 = vector.load %arg7[%c0_29, %c0_30] : memref<1x128xf32, #tpu.memory_space<vmem>>, vector<1x128xf32>
      %56 = vector.broadcast %55 : vector<1x128xf32> to vector<8x128xf32>
      %57 = arith.addf %54, %56 : vector<8x128xf32>
      %c0_31 = arith.constant 0 : index
      %c0_32 = arith.constant 0 : index
      %c0_33 = arith.constant 0 : index
      %58 = vector.load %arg8[%c0_31, %c0_32, %c0_33] : memref<1x8x128xf32, #tpu.memory_space<vmem>>, vector<1x8x128xf32>
      %59 = vector.shape_cast %58 : vector<1x8x128xf32> to vector<8x128xf32>
      %60 = vector.shape_cast %57 : vector<8x128xf32> to vector<1x8x128xf32>
      tpu.vector_store %arg8[%c0_31, %c0_32, %c0_33], %60 {strides = array<i32>} : memref<1x8x128xf32, #tpu.memory_space<vmem>>, vector<1x8x128xf32>,
    } else {
    }
    return
  }
  func.func @transform_0(%arg0: i32, %arg1: i32) -> (i32, i32) {
    %c0_i32 = arith.constant 0 : i32
    %c0_i32_0 = arith.constant 0 : i32
    %c0_i32_1 = arith.constant 0 : i32
    return %c0_i32, %c0_i32_0 : i32, i32
  }
  func.func @transform_1(%arg0: i32, %arg1: i32) -> (i32, i32) {
    %c1_i32 = arith.constant 1 : i32
    %0 = arith.muli %arg0, %c1_i32 : i32
    %1 = arith.addi %0, %arg1 : i32
    %c0_i32 = arith.constant 0 : i32
    %c0_i32_0 = arith.constant 0 : i32
    return %c0_i32, %1 : i32, i32
  }
  func.func @transform_2(%arg0: i32, %arg1: i32) -> (i32, i32) {
    %c0_i32 = arith.constant 0 : i32
    %c0_i32_0 = arith.constant 0 : i32
    %c0_i32_1 = arith.constant 0 : i32
    return %c0_i32, %c0_i32_0 : i32, i32
  }
  func.func @transform_3(%arg0: i32, %arg1: i32) -> (i32, i32) {
    %c0_i32 = arith.constant 0 : i32
    %c0_i32_0 = arith.constant 0 : i32
    %c0_i32_1 = arith.constant 0 : i32
    return %c0_i32, %c0_i32_0 : i32, i32
  }
  func.func @transform_4(%arg0: i32, %arg1: i32) -> (i32, i32) {
    %c1_i32 = arith.constant 1 : i32
    %0 = arith.muli %arg0, %c1_i32 : i32
    %1 = arith.addi %0, %arg1 : i32
    %c0_i32 = arith.constant 0 : i32
    %c0_i32_0 = arith.constant 0 : i32
    return %1, %c0_i32 : i32, i32
  }
  func.func @transform_5(%arg0: i32, %arg1: i32) -> (i32, i32) {
    %c0_i32 = arith.constant 0 : i32
    %c0_i32_0 = arith.constant 0 : i32
    %c0_i32_1 = arith.constant 0 : i32
    return %c0_i32, %c0_i32_0 : i32, i32
  }
  func.func @transform_6(%arg0: i32, %arg1: i32) -> (i32, i32, i32) {
    %c0_i32 = arith.constant 0 : i32
    %c0_i32_0 = arith.constant 0 : i32
    %c0_i32_1 = arith.constant 0 : i32
    return %arg0, %c0_i32, %c0_i32_0 : i32, i32, i32
  }
}

</mosaic_0001>

<bundles_post_ra>
// kernel: tpu_custom_call.1
= control target key start
LH: loop header
LB: loop body
LE: loop exit
PB: predicated region body
PF: predicated region fallthrough
CT: control target
= control target key end

     0   :  { %6 = vsyncpa [#allocation3], 0  ;;  %s124_s0 = inlined_call_operand.hbm [shape: f32[8,128], index: 0, kind: input, shape index: {}]   ;;  %s125_s1 = inlined_call_operand.hbm [shape: f32[8,128], index: 1, kind: output, shape index: {}]  }
   0x1   :  { %7 = vsyncpa [#allocation4], 0  ;;  %s88_s6 = smov [#allocation2]   ;;  %s40_s10 = scalar_lea.hbm %s124_s0, 128 }
   0x2   :  { %s14_s7 = sshll.u32 %s88_s6, 4  ;;  %p41_p0 = scmp.ne.s32.totalorder %s124_s0, %s40_s10  ;;  %s15_s7 = int_to_ptr.vmem [resolvable:$true] %s14_s7 }
   0x3   :  { %p44_p1 = scmp.lt.u32.totalorder %s40_s10, %s124_s0 }
   0x5   :  { %p46_p2 = pnand %p44_p1, %p41_p0 }
   0x7   :  { %49 = shalt.err (!%p46_p2)
}
   0x8   :  { %s50_s15 = scalar_lea.vmem %s15_s7, 128  ;;  %p55_p4 = scmp.lt.s32.totalorder %s15_s7, %s15_s7 }
   0x9   :  { %p51_p3 = scmp.ne.s32.totalorder %s15_s7, %s50_s15  ;;  %p56_p5 = scmp.lt.s32.totalorder %s50_s15, %s50_s15 }
   0xb   :  { %p57_p6 = por %p56_p5, %p55_p4 }
   0xd   :  { %p58_p7 = pnand %p57_p6, %p51_p3 }
   0xf   :  { %61 = shalt.err (!%p58_p7)
}
  0x10   :  { %17 = dma.hbm_to_vmem [thread:$0]  %s124_s0, 128, %s15_s7, [#allocation3]  }
  0x11   :  { %84 = dma.done.wait [#allocation3], 128  }
  0x12   :  { %85 = vsyncadd [#allocation3], 4294967168  ;;  %s89_s18 = smov [#allocation5]   ;;  %v21_v0 = vld [vmem:[#allocation2] sm:$0xff] }
  0x13   :  { %s29_s19 = sshll.u32 %s89_s18, 4  ;;  %22 = vst [vmem:[#allocation5] sm:$0xff] %v21_v0  ;;  %s30_s19 = int_to_ptr.vmem [resolvable:$true] %s29_s19 }
  0x14   :  { %s62_s20 = scalar_lea.vmem %s30_s19, 128  ;;  %p67_p9 = scmp.lt.s32.totalorder %s30_s19, %s30_s19 }
  0x15   :  { %p63_p8 = scmp.ne.s32.totalorder %s30_s19, %s62_s20  ;;  %p68_p10 = scmp.lt.s32.totalorder %s62_s20, %s62_s20 }
  0x17   :  { %p69_p11 = por %p68_p10, %p67_p9 }
  0x19   :  { %p70_p12 = pnand %p69_p11, %p63_p8 }
  0x1b   :  { %73 = shalt.err (!%p70_p12)
}
  0x1c   :  { %s74_s23 = scalar_lea.hbm %s125_s1, 128 }
  0x1d   :  { %p75_p13 = scmp.ne.s32.totalorder %s125_s1, %s74_s23  ;;  %p78_p0 = scmp.lt.u32.totalorder %s74_s23, %s125_s1 }
  0x1f   :  { %p80_p1 = pnand %p78_p0, %p75_p13 }
  0x21   :  { %83 = shalt.err (!%p80_p1)
}
  0x22   :  { %32 = dma.vmem_to_hbm [thread:$0]  %s30_s19, 128, %s125_s1, [#allocation4]  }
  0x23   :  { %86 = dma.done.wait [#allocation4], 128  }
  0x24   :  { %87 = vsyncadd [#allocation4], 4294967168 }
  0x25   :  { %36 = vsyncpa [#allocation3], 1 }
  0x26   :  { %37 = vsyncpa [#allocation4], 1 }

// kernel: mlp_head_apply.1
= control target key start
LH: loop header
LB: loop body
LE: loop exit
PB: predicated region body
PF: predicated region fallthrough
CT: control target
= control target key end

     0   :  { %11 = vsyncpa [#allocation3], 0  ;;  %s674_s0 = inlined_call_operand.vmem [shape: bf16[8,32], index: 0, kind: input, shape index: {}]   ;;  %s675_s1 = inlined_call_operand.hbm [shape: bf16[32,256], index: 1, kind: input, shape index: {}]   ;;  %s676_s2 = inlined_call_operand.vmem [shape: f32[1,256], index: 2, kind: input, shape index: {}]   ;;  %s677_s3 = inlined_call_operand.vmem [shape: f32[1,256], index: 3, kind: input, shape index: {}]   ;;  %s678_s4 = inlined_call_operand.hbm [shape: bf16[256,128], index: 4, kind: input, shape index: {}]   ;;  %s679_s5 = inlined_call_operand.vmem [shape: f32[1,128], index: 5, kind: input, shape index: {}]   ;;  %s680_s6 = inlined_call_operand.hbm [shape: f32[1,8,128], index: 6, kind: output, shape index: {}]  }
   0x1   :  { %12 = vsyncpa [#allocation6], 0 }
   0x2   :  { %13 = vsyncpa [#allocation4], 0  ;;  %s583_s21 = smov [#allocation2]   ;;  %s511_s25 = scalar_lea.hbm %s675_s1, 512 }
   0x3   :  { %s25_s22 = sshll.u32 %s583_s21, 4  ;;  %p512_p0 = scmp.ne.s32.totalorder %s675_s1, %s511_s25  ;;  %s26_s22 = int_to_ptr.vmem [resolvable:$true] %s25_s22 }
   0x4   :  { %p515_p1 = scmp.lt.u32.totalorder %s511_s25, %s675_s1 }
   0x6   :  { %p517_p2 = pnand %p515_p1, %p512_p0 }
   0x8   :  { %520 = shalt.err (!%p517_p2)
}
   0x9   :  { %s521_s30 = scalar_lea.vmem %s26_s22, 512  ;;  %p526_p4 = scmp.lt.s32.totalorder %s26_s22, %s26_s22 }
   0xa   :  { %p522_p3 = scmp.ne.s32.totalorder %s26_s22, %s521_s30  ;;  %p527_p5 = scmp.lt.s32.totalorder %s521_s30, %s521_s30 }
   0xc   :  { %p528_p6 = por %p527_p5, %p526_p4 }
   0xe   :  { %p529_p7 = pnand %p528_p6, %p522_p3 }
  0x10   :  { %532 = shalt.err (!%p529_p7)
}
  0x11   :  { %s584_s7 = smov 128   ;;  %s585_s8 = smov 8  }
  0x12   :  { %31 = dma.hbm_to_vmem [thread:$0]  %s675_s1, 512, %s26_s22, [#allocation3], %s584_s7, %s584_s7, %s585_s8  }
  0x13   :  { %s586_s11 = smov [#allocation5]   ;;  %s533_s15 = scalar_lea.hbm %s678_s4, 2048 }
  0x14   :  { %s45_s12 = sshll.u32 %s586_s11, 4  ;;  %p534_p8 = scmp.ne.s32.totalorder %s678_s4, %s533_s15  ;;  %s46_s12 = int_to_ptr.vmem [resolvable:$true] %s45_s12 }
  0x15   :  { %p537_p9 = scmp.lt.u32.totalorder %s533_s15, %s678_s4 }
  0x17   :  { %p539_p10 = pnand %p537_p9, %p534_p8 }
  0x19   :  { %542 = shalt.err (!%p539_p10)
}
  0x1a   :  { %s543_s20 = scalar_lea.vmem %s46_s12, 2048  ;;  %p548_p12 = scmp.lt.s32.totalorder %s46_s12, %s46_s12 }
  0x1b   :  { %p544_p11 = scmp.ne.s32.totalorder %s46_s12, %s543_s20  ;;  %p549_p13 = scmp.lt.s32.totalorder %s543_s20, %s543_s20 }
  0x1d   :  { %p550_p0 = por %p549_p13, %p548_p12 }
  0x1f   :  { %p551_p1 = pnand %p550_p0, %p544_p11 }
  0x21   :  { %554 = shalt.err (!%p551_p1)
}
  0x22   :  { %s587_s1 = smov 64   ;;  %s588_s21 = smov 4  }
  0x23   :  { %51 = dma.hbm_to_vmem [thread:$0]  %s678_s4, 2048, %s46_s12, [#allocation6], %s587_s1, %s587_s1, %s588_s21  }
  0x24   :  { %577 = dma.done.wait [#allocation3], 512  }
  0x25   :  { %578 = vsyncadd [#allocation3], 4294966784 }
  0x26   :  { %579 = dma.done.wait [#allocation6], 2048  }
  0x27   :  { %580 = vsyncadd [#allocation6], 4294965248  ;;  %v589_v0 = vmov 0   ;;  %v485_v1 = vld [vmem:[#allocation2 + $0x4] ss:$8 sps:$4 sm:$0xff]   ;;  %vm96_vm0 = vcmask 261120   ;;  %v191_v63 = vlaneseq }
  0x28   :  { %132 = vmatprep.mubr.bf16.mxu0 %v589_v0  ;;  %v487_v2 = vld [vmem:[#allocation2] ss:$8 sps:$4 sm:$0xff]   ;;  %100 = vmatprep.subr.bf16.mxu0 %v485_v1  ;;  %v488_v3 = vld [vmem:[#allocation2 + $0x14] ss:$8 sps:$4 sm:$0xff]   ;;  %v490_v4 = vld [vmem:[#allocation2 + $0x10] ss:$8 sps:$4 sm:$0xff]  }
  0x29   :  { %101 = vmatpush1.bf16.msra.mxu0 %v487_v2  ;;  %v71_v5 = vld [vmem:[%s674_s0] sm:$0xf]  ;;  %v491_v6 = vld [vmem:[#allocation5 + $0x40] sm:$0xff]   ;;  %v493_v8 = vld [vmem:[#allocation5 + $0x48] sm:$0xff]   ;;  %s590_s28 = smov [#allocation7]  }
  0x2a   :  { %102 = vmatprep.subr.bf16.mxu0 %v488_v3  ;;  %v492_v7 = vld [vmem:[#allocation5] sm:$0xff]   ;;  %454 = vmatprep.subr.bf16.mxu1 %v491_v6  ;;  %v494_v9 = vld [vmem:[#allocation5 + $0x8] sm:$0xff]   ;;  %v495_v10 = vld [vmem:[#allocation5 + $0x50] sm:$0xff]   ;;  %s422_s29 = sshll.u32 %s590_s28, 4  ;;  %s423_s29 = int_to_ptr.vmem [resolvable:$true] %s422_s29 }
  0x2b   :  { %455 = vmatpush3.bf16.msra.mxu1 %v492_v7  ;;  %v496_v11 = vld [vmem:[#allocation5 + $0x10] sm:$0xff]   ;;  %v497_v12 = vld [vmem:[#allocation5 + $0x58] sm:$0xff]   ;;  %v499_v14 = vld [vmem:[#allocation5 + $0x60] sm:$0xff]   ;;  %s555_s30 = scalar_lea.vmem %s423_s29, 128  ;;  %p560_p3 = scmp.lt.s32.totalorder %s423_s29, %s423_s29 }
  0x2c   :  { %456 = vmatprep.subr.bf16.mxu1 %v493_v8  ;;  %v498_v13 = vld [vmem:[#allocation5 + $0x18] sm:$0xff]   ;;  %v500_v15 = vld [vmem:[#allocation5 + $0x20] sm:$0xff]   ;;  %v501_v16 = vld [vmem:[#allocation5 + $0x68] sm:$0xff]   ;;  %p556_p2 = scmp.ne.s32.totalorder %s423_s29, %s555_s30  ;;  %p561_p4 = scmp.lt.s32.totalorder %s555_s30, %s555_s30 }
  0x2d   :  { %103 = vmatpush1.bf16.msra.mxu0 %v490_v4  ;;  %v502_v17 = vld [vmem:[#allocation5 + $0x28] sm:$0xff]   ;;  %v503_v18 = vld [vmem:[#allocation5 + $0x70] sm:$0xff]   ;;  %v505_v20 = vld [vmem:[#allocation5 + $0x78] sm:$0xff]   ;;  %v192_v4 = vshrl.u32 %v191_v63, 7 }
  0x2e   :  { %v504_v19 = vld [vmem:[#allocation5 + $0x30] sm:$0xff]   ;;  %v506_v21 = vld [vmem:[#allocation5 + $0x38] sm:$0xff]   ;;  %p562_p5 = por %p561_p4, %p560_p3 }
  0x2f   :  { %457 = vmatpush3.bf16.msra.mxu1 %v494_v9  ;;  %v193_v6 = vsub.s32 0, %v192_v4  ;;  %v143_v7 = vld [vmem:[%s676_s2] sm:$0x3]  ;;  %v197_v8 = vsub.s32 1, %v192_v4 }
  0x30   :  { %436 = vmatmul.mubr.msk.bf16.vlgmr.msra.gmra.mrb[0].mxu0 %vm96_vm0, %v71_v5  ;;  %458 = vmatprep.subr.bf16.mxu1 %v495_v10  ;;  %p563_p6 = pnand %p562_p5, %p556_p2 }
  0x31   :  { %v194_v9 = vrot.slane %v143_v7, %v193_v6  ;;  %v198_v10 = vrot.slane %v143_v7, %v197_v8 }
  0x33   :  { %459 = vmatpush3.bf16.msra.mxu1 %v496_v11 }
  0x34   :  { %460 = vmatprep.subr.bf16.mxu1 %v497_v12  ;;  %v145_v12 = vld [vmem:[%s677_s3] sm:$0x3] }
  0x37   :  { %461 = vmatpush3.bf16.msra.mxu1 %v498_v13 }
  0x38   :  { %462 = vmatprep.subr.bf16.mxu1 %v499_v14 }
  0x3b   :  { %463 = vmatpush3.bf16.msra.mxu1 %v500_v15 }
  0x3c   :  { %464 = vmatprep.subr.bf16.mxu1 %v501_v16 }
  0x3f   :  { %465 = vmatpush3.bf16.msra.mxu1 %v502_v17  ;;  %v217_v17 = vrot.slane %v145_v12, %v193_v6 }
  0x40   :  { %466 = vmatprep.subr.bf16.mxu1 %v503_v18 }
  0x43   :  { %467 = vmatpush3.bf16.msra.mxu1 %v504_v19  ;;  %v221_v19 = vrot.slane %v145_v12, %v197_v8 }
  0x44   :  { %468 = vmatprep.subr.bf16.mxu1 %v505_v20 }
  0x47   :  { %469 = vmatpush3.bf16.msra.mxu1 %v506_v21 }
 0x103   :  { %v134_v22 = vpop.f32.mrb[0].mxu0 }
 0x104   :  { %v146_v23 = vrot.slane %v134_v22, 4  ;;  %v136_v24 = vpop.f32.mrb[1].mxu0 }
 0x105   :  { %v152_v25 = vrot.slane %v136_v24, 4  ;;  %v138_v26 = vpop.f32.mrb[2].mxu0 }
 0x106   :  { %v147_v27 = vadd.f32 %v146_v23, %v134_v22  ;;  %v139_v28 = vpop.f32.mrb[3].mxu0 }
 0x107   :  { %v153_v29 = vadd.f32 %v152_v25, %v136_v24 }
 0x108   :  { %v148_v30 = vrot.slane %v147_v27, 2 }
 0x109   :  { %v154_v31 = vrot.slane %v153_v29, 2 }
 0x10a   :  { %v149_v32 = vadd.f32 %v148_v30, %v147_v27 }
 0x10b   :  { %v155_v33 = vadd.f32 %v154_v31, %v153_v29 }
 0x10c   :  { %v150_v34 = vrot.slane %v149_v32, 1 }
 0x10d   :  { %v156_v35 = vrot.slane %v155_v33, 1 }
 0x10e   :  { %v151_v36 = vadd.f32 %v150_v34, %v149_v32 }
 0x10f   :  { %v157_v37 = vadd.f32 %v156_v35, %v155_v33  ;;  %v453_v33 = vld [vmem:[%s679_s5] ss:$0 sm:$0xff] }
 0x110   :  { %v158_v38 = vmul.f32 0.125, %v151_v36 }
 0x111   :  { %v159_v39 = vmul.f32 0.125, %v157_v37 }
 0x112   :  { %v160_v40 = vsub.f32 %v134_v22, %v158_v38  ;;  %v176_v51 = vmul.f32 %v158_v38, %v158_v38 }
 0x113   :  { %v161_v41 = vsub.f32 %v136_v24, %v159_v39  ;;  %v177_v53 = vmul.f32 %v159_v39, %v159_v39 }
 0x114   :  { %v162_v42 = vmul.f32 %v160_v40, %v160_v40  ;;  %v178_v57 = vmul.f32 0.0, %v176_v51 }
 0x115   :  { %v163_v43 = vmul.f32 %v161_v41, %v161_v41  ;;  %v179_v59 = vmul.f32 0.0, %v177_v53 }
 0x116   :  { %v164_v44 = vrot.slane %v162_v42, 4 }
 0x117   :  { %v170_v45 = vrot.slane %v163_v43, 4 }
 0x118   :  { %v165_v46 = vadd.f32 %v164_v44, %v162_v42 }
 0x119   :  { %v171_v47 = vadd.f32 %v170_v45, %v163_v43 }
 0x11a   :  { %v166_v48 = vrot.slane %v165_v46, 2 }
 0x11b   :  { %v172_v49 = vrot.slane %v171_v47, 2 }
 0x11c   :  { %v167_v50 = vadd.f32 %v166_v48, %v165_v46 }
 0x11d   :  { %v173_v52 = vadd.f32 %v172_v49, %v171_v47 }
 0x11e   :  { %v168_v54 = vrot.slane %v167_v50, 1 }
 0x11f   :  { %v174_v55 = vrot.slane %v173_v52, 1 }
 0x120   :  { %v169_v56 = vadd.f32 %v168_v54, %v167_v50 }
 0x121   :  { %v175_v58 = vadd.f32 %v174_v55, %v173_v52 }
 0x122   :  { %v180_v60 = vsub.f32 %v169_v56, %v178_v57 }
 0x123   :  { %v181_v61 = vsub.f32 %v175_v58, %v179_v59 }
 0x124   :  { %v182_v62 = vmul.f32 0.125, %v180_v60 }
 0x125   :  { %v183_v0 = vmul.f32 0.125, %v181_v61 }
 0x126   :  { %v184_v1 = vmax.f32 %v182_v62, 0.0 }
 0x127   :  { %v185_v2 = vmax.f32 %v183_v0, 0.0 }
 0x128   :  { %v186_v3 = vadd.f32 1e-05, %v184_v1 }
 0x129   :  { %v187_v5 = vadd.f32 1e-05, %v185_v2 }
 0x12a   :  { %507 = vrsqrt.f32 %v186_v3 }
 0x12b   :  { %509 = vrsqrt.f32 %v187_v5 }
 0x134   :  { %v508_v11 = vpop.eup %507 }
 0x135   :  { %v510_v13 = vpop.eup %509  ;;  %v201_v14 = vmul.f32 %v508_v11, %v194_v9 }
 0x136   :  { %v202_v15 = vmul.f32 %v510_v13, %v198_v10 }
 0x137   :  { %v206_v16 = vrot.slane %v201_v14, %v193_v6 }
 0x138   :  { %v210_v18 = vrot.slane %v202_v15, %v193_v6 }
 0x139   :  { %v211_v20 = vmul.f32 %v206_v16, %v160_v40 }
 0x13a   :  { %v212_v21 = vmul.f32 %v210_v18, %v161_v41 }
 0x13b   :  { %v224_v22 = vadd.f32 %v217_v17, %v211_v20 }
 0x13c   :  { %v225_v23 = vadd.f32 %v221_v19, %v212_v21 }
 0x13d   :  { %v226_v24 = vmax.f32 %v224_v22, 0.0 }
 0x13e   :  { %v227_v25 = vmax.f32 %v225_v23, 0.0 }
 0x13f   :  { %v228_v27 = vpack.c.bf16 %v226_v24, %v226_v24 }
 0x140   :  { %v229_v26 = vpack.c.bf16 %v227_v25, %v227_v25 }
 0x142   :  { %391 = vmatprep.mubr.bf16.mxu1 %v229_v26 }
 0x143   :  { %392 = vmatmul.mubr.bf16.vlgmr.msra.gmra.mrb[0].mxu1 %v228_v27 }
 0x216   :  { %v470_v28 = vpop.f32.mrb[0].mxu1 }
 0x217   :  { %v471_v29 = vpop.f32.mrb[1].mxu1 }
 0x218   :  { %v472_v30 = vadd.f32 %v471_v29, %v470_v28  ;;  %v473_v31 = vpop.f32.mrb[2].mxu1 }
 0x219   :  { %v474_v32 = vpop.f32.mrb[3].mxu1 }
 0x21a   :  { %v414_v34 = vadd.f32 %v472_v30, %v453_v33 }
 0x21c   :  { %415 = vst [vmem:[#allocation7] sm:$0xff] %v414_v34 }
 0x21d   :  { %566 = shalt.err (!%p563_p6)
}
 0x21e   :  { %s567_s9 = scalar_lea.hbm %s680_s6, 128 }
 0x21f   :  { %p568_p7 = scmp.ne.s32.totalorder %s680_s6, %s567_s9  ;;  %p571_p8 = scmp.lt.u32.totalorder %s567_s9, %s680_s6 }
 0x221   :  { %p573_p9 = pnand %p571_p8, %p568_p7 }
 0x223   :  { %576 = shalt.err (!%p573_p9)
}
 0x224   :  { %425 = dma.vmem_to_hbm [thread:$0]  %s423_s29, 128, %s680_s6, [#allocation4]  }
 0x225   :  { %581 = dma.done.wait [#allocation4], 128  }
 0x226   :  { %582 = vsyncadd [#allocation4], 4294967168 }
 0x227   :  { %429 = vsyncpa [#allocation3], 1 }
 0x228   :  { %430 = vsyncpa [#allocation6], 1 }
 0x229   :  { %431 = vsyncpa [#allocation4], 1 }

</bundles_post_ra>
